<compile_context>
chip_gen: v5e
topology: v5e:2x2
jax: 0.10.0
libtpu: 0.0.40
codegen_flags: <defaults>
</compile_context>

<pallas_src>
import functools
from functools import partial

import numpy as np
import jax
import jax.numpy as jnp
from jax import lax
from jax.experimental import pallas as pl
from jax.experimental.pallas import tpu as pltpu


# ----------------------------------------------------------------------------
# Host-side glue (ports of the data-dependent Python/dict helpers)
# ----------------------------------------------------------------------------
def create_mapping(spans, clusters):
    num_batch = len(spans)
    max_spans = max(len(x) for x in spans)
    max_concepts = max(len(x) for x in clusters)
    mapping = np.zeros((num_batch, max_concepts, max_spans), np.float32)
    for batch, (myspans, myclusters) in enumerate(zip(spans, clusters)):
        span2index = {span: idx for idx, span in enumerate(myspans)}
        for idx, cluster in enumerate(myclusters):
            for span in cluster:
                if span in span2index:
                    mapping[batch, idx, span2index[span]] = 1.0
    return mapping


def create_relation_targets_native(pred_spans, relations, num_relations, span_lengths):
    """Same semantics as the PyTorch create_relation_targets_2: native
    (B, M, M, R) layout, binary uint8."""
    gold_spans = relations['gold_spans']
    gold_m2i = relations['gold_m2i']
    gold_relations = relations['gold_relations']
    num_concepts = relations['num_concepts']
    num_batch = len(span_lengths)
    max_spans = int(np.max(np.asarray(span_lengths)))
    targets = np.zeros((num_batch, max_spans, max_spans, num_relations), np.uint8)
    for batch, (p_spans, g_spans, m2i, rels, max_clusters) in enumerate(
            zip(pred_spans, gold_spans, gold_m2i, gold_relations, num_concepts)):
        if len(rels) > 0:
            gold2index = {span: idx for span, idx in zip(g_spans, m2i)}
            pred2cluster = np.array(
                [gold2index.get(span, max_clusters) for span in p_spans], np.int64)
            rels_np = np.array(rels, np.int64)
            ct = np.zeros((max_clusters + 1, max_clusters + 1, num_relations), np.uint8)
            ct[rels_np[:, 0], rels_np[:, 1], rels_np[:, 2]] = 1
            n = len(p_spans)
            targets[batch, :n, :n, :] = ct[pred2cluster[:, None], pred2cluster[None, :], :]
    return targets


def decode_relations_new(targets, lengths, labels):
    relations = []
    for b, length in enumerate(lengths):
        rels = []
        nz = np.argwhere(targets[b, 0:length, 0:length, :] > 0)
        for src, dst, rel in nz.tolist():
            rels.append((src, dst, labels[rel]))
        relations.append(rels)
    return relations


# ----------------------------------------------------------------------------
# Tiling helpers (VMEM-budget aware, safe on v5e / v6e / v7x)
# ----------------------------------------------------------------------------
_VMEM_LIMIT = 40 * 1024 * 1024     # explicit raise over v5e's 16 MiB default,
                                   # kept <= ~40 MiB so buffers fit v7x's 64 MiB
_BLOCK_BUDGET = 24 * 1024 * 1024   # budget for live (double-buffered) blocks


def _choose_row_tile(m, mr, elem_bytes=8):
    # ~elem_bytes per element: f32 scores + u8 targets + u8 mask + bf16 preds
    cands = [d for d in range(1, m + 1)
             if m % d == 0 and (d % 32 == 0 or d == m)]
    fit = [d for d in cands if 2 * elem_bytes * d * mr <= _BLOCK_BUDGET]
    return max(fit) if fit else min(cands)


def _choose_rel_tile(r, m, c):
    def fits(rt):
        return 2 * (m * rt * m + 4 * c * rt * c + c * m) <= _BLOCK_BUDGET
    if fits(r):
        return r
    cands = [d for d in range(1, r) if r % d == 0
             and (d * m) % 128 == 0 and (d * c) % 128 == 0 and fits(d)]
    return max(cands) if cands else r


# ----------------------------------------------------------------------------
# Kernel 1: masked BCE-with-logits over the native lane-dense (M, M*R) layout,
#           optionally emitting the thresholded predictions (predict path).
# ----------------------------------------------------------------------------
def _bce_body(x_ref, t_ref, m_ref, loss_ref, pred_ref):
    x = x_ref[0].astype(jnp.float32)          # (Mt, M*R) logits
    t = t_ref[0].astype(jnp.float32)          # binary targets (uint8 -> f32)
    m = m_ref[0].astype(jnp.float32)          # binary mask    (uint8 -> f32)
    # numerically-stable BCE-with-logits; e <= 1 so plain log(1+e) is accurate
    # (series branch dropped per perf review -- no measurable accuracy change).
    e = jnp.exp(-jnp.abs(x))
    loss = (jnp.maximum(x, 0.0) - x * t + jnp.log(1.0 + e)) * m
    loss_ref[...] = jnp.zeros_like(loss_ref) + jnp.sum(loss)
    if pred_ref is not None:
        # Thresholded predictions in the native layout. Padded-region logits may
        # be > 0, but the concept mapping U has zero columns for padded spans so
        # they never reach the decoded relations (same invariant as PyTorch).
        pred_ref[0] = (x > 0.0).astype(jnp.bfloat16)


def _bce_kernel(x_ref, t_ref, m_ref, loss_ref):
    _bce_body(x_ref, t_ref, m_ref, loss_ref, None)


def _bce_pred_kernel(x_ref, t_ref, m_ref, loss_ref, pred_ref):
    _bce_body(x_ref, t_ref, m_ref, loss_ref, pred_ref)


def _bce_loss_call(scores_flat, targets_flat, mask_flat, emit_pred):
    B, M, MR = scores_flat.shape
    mt = _choose_row_tile(M, MR)
    T = M // mt

    def data_spec():
        return pl.BlockSpec((1, mt, MR), lambda b, t: (b, t, 0))

    loss_shape = jax.ShapeDtypeStruct((B, T, 1, 1), jnp.float32)
    loss_spec = pl.BlockSpec((1, 1, 1, 1), lambda b, t: (b, t, 0, 0))

    elems = B * M * MR
    in_bytes = scores_flat.dtype.itemsize * elems + 2 * elems
    if emit_pred:
        kernel = _bce_pred_kernel
        out_shape = (loss_shape, jax.ShapeDtypeStruct((B, M, MR), jnp.bfloat16))
        out_specs = [loss_spec, data_spec()]
        out_bytes = 4 * B * T + 2 * elems
    else:
        kernel = _bce_kernel
        out_shape = loss_shape
        out_specs = loss_spec
        out_bytes = 4 * B * T

    cost = pl.CostEstimate(flops=10 * elems, transcendentals=2 * elems,
                           bytes_accessed=in_bytes + out_bytes)
    return pl.pallas_call(
        kernel,
        out_shape=out_shape,
        grid_spec=pltpu.PrefetchScalarGridSpec(
            num_scalar_prefetch=0,
            grid=(B, T),
            in_specs=[data_spec(), data_spec(), data_spec()],
            out_specs=out_specs),
        compiler_params=pltpu.CompilerParams(
            dimension_semantics=("parallel", "parallel"),
            vmem_limit_bytes=_VMEM_LIMIT),
        cost_estimate=cost,
    )(scores_flat, targets_flat, mask_flat)


# ----------------------------------------------------------------------------
# Kernel 2: concept aggregation  q[b, r] = U @ S_r @ U^T  (thresholded > 0)
#           over relation-concatenated binary matrices  S (B, M, R*M).
# ----------------------------------------------------------------------------
def _quad_form_kernel(s_ref, u_ref, q_ref, *, rt, m, c):
    s = s_ref[0].astype(jnp.float32)          # (M, rt*M) binary
    u = u_ref[0].astype(jnp.float32)          # (C, M)    binary concept mapping
    # stage 1: ONE lane-dense MXU matmul covering all rt relations of the block
    a = jnp.dot(u, s, preferred_element_type=jnp.float32)        # (C, rt*M)
    # stage 2: per-relation (C,M)x(M,C) contraction, kept in f32 (exact integer
    # counts); thresholded in-kernel. The HBM writeback is one lane-dense
    # (C, rt*C) block per grid step.
    for r in range(rt):
        a_r = a[:, r * m:(r + 1) * m]                            # (C, M) static slice
        q = lax.dot_general(a_r, u, (((1,), (1,)), ((), ())),
                            preferred_element_type=jnp.float32)  # (C, C)
        q_ref[0, :, r * c:(r + 1) * c] = (q > 0.0).astype(jnp.float32)


def _quad_form_call(s_cat, u):
    B, M, RM = s_cat.shape
    C = u.shape[1]
    R = RM // M
    rt = _choose_rel_tile(R, M, C)
    n_rt = R // rt
    return pl.pallas_call(
        functools.partial(_quad_form_kernel, rt=rt, m=M, c=C),
        out_shape=jax.ShapeDtypeStruct((B, C, R * C), jnp.float32),
        grid_spec=pltpu.PrefetchScalarGridSpec(
            num_scalar_prefetch=0,
            grid=(B, n_rt),
            in_specs=[pl.BlockSpec((1, M, rt * M), lambda b, j: (b, 0, j)),
                      pl.BlockSpec((1, C, M), lambda b, j: (b, 0, 0))],
            out_specs=pl.BlockSpec((1, C, rt * C), lambda b, j: (b, 0, j))),
        compiler_params=pltpu.CompilerParams(
            dimension_semantics=("parallel", "parallel"),
            vmem_limit_bytes=_VMEM_LIMIT),
    )(s_cat, u)


# ----------------------------------------------------------------------------
# Single jitted device forward (all device work launched before any host pull)
# ----------------------------------------------------------------------------
@partial(jax.jit, static_argnames=("predict",))
def _device_forward(scores, targets_native, targets_cat, mask_native, u, *, predict):
    B, M, M2, R = scores.shape
    # free reshape (merges contiguous trailing dims) -- the f32 scores are read
    # from HBM exactly once, in their native layout; no f32 transpose anywhere.
    scores_flat = scores.reshape(B, M, M2 * R)
    if predict:
        loss_partials, pred_bf16 = _bce_loss_call(scores_flat, targets_native,
                                                  mask_native, True)
    else:
        loss_partials = _bce_loss_call(scores_flat, targets_native, mask_native, False)
    total = jnp.sum(loss_partials)
    q_targets = _quad_form_call(targets_cat, u)
    if predict:
        # predict-only relayout of the already-thresholded bf16 predictions to
        # the relation-concatenated layout (far cheaper than the old always-on
        # f32 transpose, and off the training hot path).
        pred_cat = (pred_bf16.reshape(B, M, M2, R)
                    .transpose(0, 1, 3, 2)
                    .reshape(B, M, R * M2))
        q_pred = _quad_form_call(pred_cat, u)
        return total, q_targets, q_pred
    return total, q_targets


# ----------------------------------------------------------------------------
# Module
# ----------------------------------------------------------------------------
class LossRelationsX:
    def __init__(self, name, config, labels):
        self.name = name
        self.num_relations = len(labels)
        self.labels = labels
        self.enabled = config['enabled']
        self.weight = (config['weight'] / len(self.labels)
                       if config.get('normalize', True) else config['weight'])
        self.debug = config['debug']

    def forward(self, relation_filtered, mention_scores, relations, coref, predict=False):
        output = {}
        span_lengths = relation_filtered['span_lengths']
        mention_mask = relation_filtered['square_mask']
        pred_spans = relation_filtered['spans']

        if not self.enabled:
            output['loss'] = jnp.array(0.0, jnp.float32)
            output['pred'] = None
            output['gold'] = None
            return output['loss'], output

        R = self.num_relations
        B = mention_scores.shape[0]
        M = mention_scores.shape[1]

        # host-side sparse construction (dict/list processing stays on host)
        targets_native = create_relation_targets_native(pred_spans, relations, R,
                                                        span_lengths)  # (B,M,M,R) u8
        mapping_np = create_mapping(pred_spans, coref['pred'])          # (B,C,M)
        C = mapping_np.shape[1]

        mask_np = np.asarray(mention_mask)
        mask_exp = np.broadcast_to((mask_np != 0)[..., None],
                                   targets_native.shape).astype(np.uint8)

        # binary tensors ship as uint8; targets in both layouts the kernels need
        t_native = jnp.asarray(targets_native.reshape(B, M, M * R))
        t_cat = jnp.asarray(np.ascontiguousarray(
            targets_native.transpose(0, 1, 3, 2)).reshape(B, M, R * M))
        mask_flat = jnp.asarray(mask_exp.reshape(B, M, M * R))
        u_dev = jnp.asarray(mapping_np.astype(np.uint8))

        do_pred = bool(predict) and mention_scores is not None
        if do_pred:
            total, q_t, q_p = _device_forward(mention_scores, t_native, t_cat,
                                              mask_flat, u_dev, predict=True)
        else:
            total, q_t = _device_forward(mention_scores, t_native, t_cat,
                                         mask_flat, u_dev, predict=False)
            q_p = None

        output['loss'] = self.weight * total / self.num_relations

        concept_lengths = [len(x) for x in coref['pred']]
        if q_p is not None:
            q_t_np, q_p_np = jax.device_get((q_t, q_p))
        else:
            q_t_np = jax.device_get(q_t)
            q_p_np = None

        def to_ccr(q):   # (B, C, R*C) -> (B, C, C, R) for the decoder
            return np.transpose(q.reshape(q.shape[0], C, R, C), (0, 1, 3, 2))

        mytargets = decode_relations_new(to_ccr(q_t_np), concept_lengths, self.labels)
        output['target'] = [[(clusters[src], clusters[dst], rel)
                             for src, dst, rel in triples]
                            for clusters, triples in zip(coref['pred'], mytargets)]

        if predict:
            if mention_scores is None:
                output['pred'] = [[] for _ in coref['pred']]
            else:
                predictions = decode_relations_new(to_ccr(q_p_np), concept_lengths,
                                                   self.labels)
                output['pred'] = [[(clusters[src], clusters[dst], rel)
                                   for src, dst, rel in triples]
                                  for clusters, triples in zip(coref['pred'],
                                                               predictions)]
            output['gold'] = [[(clusters[src], clusters[dst], self.labels[rel])
                               for src, dst, rel in triples]
                              for clusters, triples in zip(relations['gold_clusters2'],
                                                           relations['gold_relations'])]
        return output['loss'], output


# ----------------------------------------------------------------------------
# Example
# ----------------------------------------------------------------------------
if __name__ == "__main__":
    key = jax.random.PRNGKey(0)

    labels = ["r0", "r1", "r2", "r3"]
    R = len(labels)
    B, M, C = 2, 8, 4   # batch, max spans, max concepts

    pred_spans = [
        [(i, i + 1) for i in range(8)],   # 8 spans
        [(i, i + 2) for i in range(6)],   # 6 spans
    ]
    span_lengths = np.array([8, 6], np.int32)

    square_mask_np = np.zeros((B, M, M), np.float32)
    square_mask_np[0, :8, :8] = 1.0
    square_mask_np[1, :6, :6] = 1.0

    coref = {'pred': [
        [[(0, 1), (1, 2)], [(2, 3), (3, 4)], [(4, 5)], [(5, 6), (6, 7), (7, 8)]],
        [[(0, 2), (1, 3)], [(2, 4), (3, 5)], [(4, 6), (5, 7)]],
    ]}

    relations = {
        'gold_spans': [
            [(0, 1), (1, 2), (2, 3), (4, 5), (6, 7)],
            [(0, 2), (2, 4), (4, 6)],
        ],
        'gold_m2i': [
            [0, 0, 1, 2, 3],
            [0, 1, 2],
        ],
        'gold_relations': [
            [(0, 1, 0), (1, 2, 2), (0, 3, 3)],
            [(0, 1, 1), (2, 0, 3)],
        ],
        'num_concepts': [4, 3],
        'gold_clusters2': [
            [[(0, 1), (1, 2)], [(2, 3)], [(4, 5)], [(6, 7)]],
            [[(0, 2)], [(2, 4)], [(4, 6)]],
        ],
    }

    mention_scores = jax.random.normal(key, (B, M, M, R), jnp.float32)

    relation_filtered = {
        'span_lengths': span_lengths,
        'square_mask': jnp.asarray(square_mask_np),
        'spans': pred_spans,
    }

    config = {'enabled': True, 'weight': 1.0, 'normalize': True, 'debug': False}
    module = LossRelationsX("relations", config, labels)

    loss, output = module.forward(relation_filtered, mention_scores, relations, coref,
                                  predict=True)
    jax.block_until_ready(loss)
    print("KERNEL_OK")
</pallas_src>

<mosaic_0001>
module attributes {stable_mosaic.version = 11 : i64} {
  func.func @_bce_pred_kernel(%arg0: i32, %arg1: i32, %arg2: memref<1x8x32xf32, #tpu.memory_space<vmem>>, %arg3: memref<1x8x32xi8, #tpu.memory_space<vmem>>, %arg4: memref<1x8x32xi8, #tpu.memory_space<vmem>>, %arg5: memref<1x1x1x1xf32, #tpu.memory_space<vmem>>, %arg6: memref<1x8x32xbf16, #tpu.memory_space<vmem>>) attributes {dimension_semantics = [#tpu.dimension_semantics<parallel>, #tpu.dimension_semantics<parallel>], iteration_bounds = array<i64: 2, 1>, scalar_prefetch = 0 : i64, scratch_operands = 0 : i64, tpu.core_type = #tpu.core_type<tc>, window_params = [{transform_indices = @transform_0, window_bounds = array<i64: 1, 8, 32>}, {transform_indices = @transform_1, window_bounds = array<i64: 1, 8, 32>}, {transform_indices = @transform_2, window_bounds = array<i64: 1, 8, 32>}, {transform_indices = @transform_3, window_bounds = array<i64: 1, 1, 1, 1>}, {transform_indices = @transform_4, window_bounds = array<i64: 1, 8, 32>}]} {
    %c0 = arith.constant 0 : index
    %c0_0 = arith.constant 0 : index
    %c0_1 = arith.constant 0 : index
    %0 = vector.load %arg2[%c0, %c0_0, %c0_1] : memref<1x8x32xf32, #tpu.memory_space<vmem>>, vector<1x8x32xf32>
    %1 = vector.shape_cast %0 : vector<1x8x32xf32> to vector<8x32xf32>
    %c0_2 = arith.constant 0 : index
    %c0_3 = arith.constant 0 : index
    %c0_4 = arith.constant 0 : index
    %2 = vector.load %arg3[%c0_2, %c0_3, %c0_4] : memref<1x8x32xi8, #tpu.memory_space<vmem>>, vector<1x8x32xi8>
    %3 = vector.shape_cast %2 : vector<1x8x32xi8> to vector<8x32xi8>
    %4 = arith.uitofp %3 : vector<8x32xi8> to vector<8x32xf32>
    %c0_5 = arith.constant 0 : index
    %c0_6 = arith.constant 0 : index
    %c0_7 = arith.constant 0 : index
    %5 = vector.load %arg4[%c0_5, %c0_6, %c0_7] : memref<1x8x32xi8, #tpu.memory_space<vmem>>, vector<1x8x32xi8>
    %6 = vector.shape_cast %5 : vector<1x8x32xi8> to vector<8x32xi8>
    %7 = arith.uitofp %6 : vector<8x32xi8> to vector<8x32xf32>
    %8 = math.absf %1 : vector<8x32xf32>
    %cst = arith.constant 0.000000e+00 : f32
    %9 = vector.broadcast %cst : f32 to vector<8x32xf32>
    %10 = arith.subf %9, %8 : vector<8x32xf32>
    %11 = math.exp %10 : vector<8x32xf32>
    %cst_8 = arith.constant 0.000000e+00 : f32
    %12 = vector.broadcast %cst_8 : f32 to vector<8x32xf32>
    %13 = arith.maximumf %1, %12 : vector<8x32xf32>
    %14 = arith.mulf %1, %4 : vector<8x32xf32>
    %15 = arith.subf %13, %14 : vector<8x32xf32>
    %cst_9 = arith.constant 1.000000e+00 : f32
    %16 = vector.broadcast %cst_9 : f32 to vector<8x32xf32>
    %17 = arith.addf %16, %11 : vector<8x32xf32>
    %18 = math.log %17 : vector<8x32xf32>
    %19 = arith.addf %15, %18 : vector<8x32xf32>
    %20 = arith.mulf %19, %7 : vector<8x32xf32>
    %cst_10 = arith.constant 0.000000e+00 : f32
    %21 = vector.broadcast %cst_10 : f32 to vector<1x1x1x1xf32>
    %22 = vector.shape_cast %20 : vector<8x32xf32> to vector<1x8x32xf32>
    %cst_11 = arith.constant dense<0.000000e+00> : vector<1xf32>
    %23 = vector.multi_reduction <add>, %22, %cst_11 [1, 2] : vector<1x8x32xf32> to vector<1xf32>
    %24 = vector.shape_cast %23 : vector<1xf32> to vector<1x1x1xf32>
    %25 = vector.extract %24[0, 0, 0] : f32 from vector<1x1x1xf32>
    %26 = vector.broadcast %25 : f32 to vector<1x1x1x1xf32>
    %27 = arith.addf %21, %26 : vector<1x1x1x1xf32>
    %c0_12 = arith.constant 0 : index
    %c0_13 = arith.constant 0 : index
    %c0_14 = arith.constant 0 : index
    %c0_15 = arith.constant 0 : index
    %28 = vector.load %arg5[%c0_12, %c0_13, %c0_14, %c0_15] : memref<1x1x1x1xf32, #tpu.memory_space<vmem>>, vector<1x1x1x1xf32>
    tpu.vector_store %arg5[%c0_12, %c0_13, %c0_14, %c0_15], %27 {strides = array<i32>} : memref<1x1x1x1xf32, #tpu.memory_space<vmem>>, vector<1x1x1x1xf32>,
    %cst_16 = arith.constant 0.000000e+00 : f32
    %29 = vector.broadcast %cst_16 : f32 to vector<8x32xf32>
    %30 = arith.cmpf ogt, %1, %29 : vector<8x32xf32>
    %31 = arith.extui %30 : vector<8x32xi1> to vector<8x32xi32>
    %32 = arith.sitofp %31 : vector<8x32xi32> to vector<8x32xf32>
    %33 = arith.truncf %32 : vector<8x32xf32> to vector<8x32xbf16>
    %c0_17 = arith.constant 0 : index
    %c0_18 = arith.constant 0 : index
    %c0_19 = arith.constant 0 : index
    %34 = vector.load %arg6[%c0_17, %c0_18, %c0_19] : memref<1x8x32xbf16, #tpu.memory_space<vmem>>, vector<1x8x32xbf16>
    %35 = vector.shape_cast %34 : vector<1x8x32xbf16> to vector<8x32xbf16>
    %36 = vector.shape_cast %33 : vector<8x32xbf16> to vector<1x8x32xbf16>
    tpu.vector_store %arg6[%c0_17, %c0_18, %c0_19], %36 {strides = array<i32>} : memref<1x8x32xbf16, #tpu.memory_space<vmem>>, vector<1x8x32xbf16>,
    return
  }
  func.func @transform_0(%arg0: i32, %arg1: i32) -> (i32, i32, i32) {
    %c0_i32 = arith.constant 0 : i32
    %c0_i32_0 = arith.constant 0 : i32
    return %arg0, %arg1, %c0_i32 : i32, i32, i32
  }
  func.func @transform_1(%arg0: i32, %arg1: i32) -> (i32, i32, i32) {
    %c0_i32 = arith.constant 0 : i32
    %c0_i32_0 = arith.constant 0 : i32
    return %arg0, %arg1, %c0_i32 : i32, i32, i32
  }
  func.func @transform_2(%arg0: i32, %arg1: i32) -> (i32, i32, i32) {
    %c0_i32 = arith.constant 0 : i32
    %c0_i32_0 = arith.constant 0 : i32
    return %arg0, %arg1, %c0_i32 : i32, i32, i32
  }
  func.func @transform_3(%arg0: i32, %arg1: i32) -> (i32, i32, i32, i32) {
    %c0_i32 = arith.constant 0 : i32
    %c0_i32_0 = arith.constant 0 : i32
    %c0_i32_1 = arith.constant 0 : i32
    return %arg0, %arg1, %c0_i32, %c0_i32_0 : i32, i32, i32, i32
  }
  func.func @transform_4(%arg0: i32, %arg1: i32) -> (i32, i32, i32) {
    %c0_i32 = arith.constant 0 : i32
    %c0_i32_0 = arith.constant 0 : i32
    return %arg0, %arg1, %c0_i32 : i32, i32, i32
  }
}

module attributes {stable_mosaic.version = 11 : i64} {
  func.func @_quad_form_kernel(%arg0: i32, %arg1: i32, %arg2: memref<1x8x32xbf16, #tpu.memory_space<vmem>>, %arg3: memref<1x4x8xi8, #tpu.memory_space<vmem>>, %arg4: memref<1x4x16xf32, #tpu.memory_space<vmem>>) attributes {dimension_semantics = [#tpu.dimension_semantics<parallel>, #tpu.dimension_semantics<parallel>], iteration_bounds = array<i64: 2, 1>, scalar_prefetch = 0 : i64, scratch_operands = 0 : i64, tpu.core_type = #tpu.core_type<tc>, window_params = [{transform_indices = @transform_0, window_bounds = array<i64: 1, 8, 32>}, {transform_indices = @transform_1, window_bounds = array<i64: 1, 4, 8>}, {transform_indices = @transform_2, window_bounds = array<i64: 1, 4, 16>}]} {
    %c0 = arith.constant 0 : index
    %c0_0 = arith.constant 0 : index
    %c0_1 = arith.constant 0 : index
    %0 = vector.load %arg2[%c0, %c0_0, %c0_1] : memref<1x8x32xbf16, #tpu.memory_space<vmem>>, vector<1x8x32xbf16>
    %1 = vector.shape_cast %0 : vector<1x8x32xbf16> to vector<8x32xbf16>
    %2 = arith.extf %1 : vector<8x32xbf16> to vector<8x32xf32>
    %c0_2 = arith.constant 0 : index
    %c0_3 = arith.constant 0 : index
    %c0_4 = arith.constant 0 : index
    %3 = vector.load %arg3[%c0_2, %c0_3, %c0_4] : memref<1x4x8xi8, #tpu.memory_space<vmem>>, vector<1x4x8xi8>
    %4 = vector.shape_cast %3 : vector<1x4x8xi8> to vector<4x8xi8>
    %5 = arith.uitofp %4 : vector<4x8xi8> to vector<4x8xf32>
    %cst = arith.constant dense<0.000000e+00> : vector<4x32xf32>
    %6 = tpu.matmul %5, %2, %cst {dimension_numbers = #tpu.dot_dimension_numbers<[1], [0], [0], [1], [0, 0, 1, 1], [], []>} : vector<4x8xf32>, vector<8x32xf32>, vector<4x32xf32> -> vector<4x32xf32>
    %7 = vector.extract_strided_slice %6 {offsets = [0, 0], sizes = [4, 8], strides = [1, 1]} : vector<4x32xf32> to vector<4x8xf32>
    %cst_5 = arith.constant dense<0.000000e+00> : vector<4x4xf32>
    %8 = tpu.matmul %7, %5, %cst_5 {dimension_numbers = #tpu.dot_dimension_numbers<[1], [1], [0], [0], [0, 0, 1, 0], [], []>} : vector<4x8xf32>, vector<4x8xf32>, vector<4x4xf32> -> vector<4x4xf32>
    %cst_6 = arith.constant 0.000000e+00 : f32
    %9 = vector.broadcast %cst_6 : f32 to vector<4x4xf32>
    %10 = arith.cmpf ogt, %8, %9 : vector<4x4xf32>
    %11 = arith.extui %10 : vector<4x4xi1> to vector<4x4xi32>
    %12 = arith.sitofp %11 : vector<4x4xi32> to vector<4x4xf32>
    %c0_7 = arith.constant 0 : index
    %c0_8 = arith.constant 0 : index
    %c0_9 = arith.constant 0 : index
    %13 = vector.load %arg4[%c0_7, %c0_8, %c0_9] : memref<1x4x16xf32, #tpu.memory_space<vmem>>, vector<1x4x4xf32>
    %14 = vector.shape_cast %13 : vector<1x4x4xf32> to vector<4x4xf32>
    %15 = vector.shape_cast %12 : vector<4x4xf32> to vector<1x4x4xf32>
    tpu.vector_store %arg4[%c0_7, %c0_8, %c0_9], %15 {strides = array<i32>} : memref<1x4x16xf32, #tpu.memory_space<vmem>>, vector<1x4x4xf32>,
    %16 = vector.extract_strided_slice %6 {offsets = [0, 8], sizes = [4, 8], strides = [1, 1]} : vector<4x32xf32> to vector<4x8xf32>
    %cst_10 = arith.constant dense<0.000000e+00> : vector<4x4xf32>
    %17 = tpu.matmul %16, %5, %cst_10 {dimension_numbers = #tpu.dot_dimension_numbers<[1], [1], [0], [0], [0, 0, 1, 0], [], []>} : vector<4x8xf32>, vector<4x8xf32>, vector<4x4xf32> -> vector<4x4xf32>
    %cst_11 = arith.constant 0.000000e+00 : f32
    %18 = vector.broadcast %cst_11 : f32 to vector<4x4xf32>
    %19 = arith.cmpf ogt, %17, %18 : vector<4x4xf32>
    %20 = arith.extui %19 : vector<4x4xi1> to vector<4x4xi32>
    %21 = arith.sitofp %20 : vector<4x4xi32> to vector<4x4xf32>
    %c0_12 = arith.constant 0 : index
    %c0_13 = arith.constant 0 : index
    %c4 = arith.constant 4 : index
    %22 = vector.load %arg4[%c0_12, %c0_13, %c4] : memref<1x4x16xf32, #tpu.memory_space<vmem>>, vector<1x4x4xf32>
    %23 = vector.shape_cast %22 : vector<1x4x4xf32> to vector<4x4xf32>
    %24 = vector.shape_cast %21 : vector<4x4xf32> to vector<1x4x4xf32>
    tpu.vector_store %arg4[%c0_12, %c0_13, %c4], %24 {strides = array<i32>} : memref<1x4x16xf32, #tpu.memory_space<vmem>>, vector<1x4x4xf32>,
    %25 = vector.extract_strided_slice %6 {offsets = [0, 16], sizes = [4, 8], strides = [1, 1]} : vector<4x32xf32> to vector<4x8xf32>
    %cst_14 = arith.constant dense<0.000000e+00> : vector<4x4xf32>
    %26 = tpu.matmul %25, %5, %cst_14 {dimension_numbers = #tpu.dot_dimension_numbers<[1], [1], [0], [0], [0, 0, 1, 0], [], []>} : vector<4x8xf32>, vector<4x8xf32>, vector<4x4xf32> -> vector<4x4xf32>
    %cst_15 = arith.constant 0.000000e+00 : f32
    %27 = vector.broadcast %cst_15 : f32 to vector<4x4xf32>
    %28 = arith.cmpf ogt, %26, %27 : vector<4x4xf32>
    %29 = arith.extui %28 : vector<4x4xi1> to vector<4x4xi32>
    %30 = arith.sitofp %29 : vector<4x4xi32> to vector<4x4xf32>
    %c0_16 = arith.constant 0 : index
    %c0_17 = arith.constant 0 : index
    %c8 = arith.constant 8 : index
    %31 = vector.load %arg4[%c0_16, %c0_17, %c8] : memref<1x4x16xf32, #tpu.memory_space<vmem>>, vector<1x4x4xf32>
    %32 = vector.shape_cast %31 : vector<1x4x4xf32> to vector<4x4xf32>
    %33 = vector.shape_cast %30 : vector<4x4xf32> to vector<1x4x4xf32>
    tpu.vector_store %arg4[%c0_16, %c0_17, %c8], %33 {strides = array<i32>} : memref<1x4x16xf32, #tpu.memory_space<vmem>>, vector<1x4x4xf32>,
    %34 = vector.extract_strided_slice %6 {offsets = [0, 24], sizes = [4, 8], strides = [1, 1]} : vector<4x32xf32> to vector<4x8xf32>
    %cst_18 = arith.constant dense<0.000000e+00> : vector<4x4xf32>
    %35 = tpu.matmul %34, %5, %cst_18 {dimension_numbers = #tpu.dot_dimension_numbers<[1], [1], [0], [0], [0, 0, 1, 0], [], []>} : vector<4x8xf32>, vector<4x8xf32>, vector<4x4xf32> -> vector<4x4xf32>
    %cst_19 = arith.constant 0.000000e+00 : f32
    %36 = vector.broadcast %cst_19 : f32 to vector<4x4xf32>
    %37 = arith.cmpf ogt, %35, %36 : vector<4x4xf32>
    %38 = arith.extui %37 : vector<4x4xi1> to vector<4x4xi32>
    %39 = arith.sitofp %38 : vector<4x4xi32> to vector<4x4xf32>
    %c0_20 = arith.constant 0 : index
    %c0_21 = arith.constant 0 : index
    %c12 = arith.constant 12 : index
    %40 = vector.load %arg4[%c0_20, %c0_21, %c12] : memref<1x4x16xf32, #tpu.memory_space<vmem>>, vector<1x4x4xf32>
    %41 = vector.shape_cast %40 : vector<1x4x4xf32> to vector<4x4xf32>
    %42 = vector.shape_cast %39 : vector<4x4xf32> to vector<1x4x4xf32>
    tpu.vector_store %arg4[%c0_20, %c0_21, %c12], %42 {strides = array<i32>} : memref<1x4x16xf32, #tpu.memory_space<vmem>>, vector<1x4x4xf32>,
    return
  }
  func.func @transform_0(%arg0: i32, %arg1: i32) -> (i32, i32, i32) {
    %c0_i32 = arith.constant 0 : i32
    %c0_i32_0 = arith.constant 0 : i32
    return %arg0, %c0_i32, %arg1 : i32, i32, i32
  }
  func.func @transform_1(%arg0: i32, %arg1: i32) -> (i32, i32, i32) {
    %c0_i32 = arith.constant 0 : i32
    %c0_i32_0 = arith.constant 0 : i32
    %c0_i32_1 = arith.constant 0 : i32
    return %arg0, %c0_i32, %c0_i32_0 : i32, i32, i32
  }
  func.func @transform_2(%arg0: i32, %arg1: i32) -> (i32, i32, i32) {
    %c0_i32 = arith.constant 0 : i32
    %c0_i32_0 = arith.constant 0 : i32
    return %arg0, %c0_i32, %arg1 : i32, i32, i32
  }
}

module attributes {stable_mosaic.version = 11 : i64} {
  func.func @_quad_form_kernel(%arg0: i32, %arg1: i32, %arg2: memref<1x8x32xi8, #tpu.memory_space<vmem>>, %arg3: memref<1x4x8xi8, #tpu.memory_space<vmem>>, %arg4: memref<1x4x16xf32, #tpu.memory_space<vmem>>) attributes {dimension_semantics = [#tpu.dimension_semantics<parallel>, #tpu.dimension_semantics<parallel>], iteration_bounds = array<i64: 2, 1>, scalar_prefetch = 0 : i64, scratch_operands = 0 : i64, tpu.core_type = #tpu.core_type<tc>, window_params = [{transform_indices = @transform_0, window_bounds = array<i64: 1, 8, 32>}, {transform_indices = @transform_1, window_bounds = array<i64: 1, 4, 8>}, {transform_indices = @transform_2, window_bounds = array<i64: 1, 4, 16>}]} {
    %c0 = arith.constant 0 : index
    %c0_0 = arith.constant 0 : index
    %c0_1 = arith.constant 0 : index
    %0 = vector.load %arg2[%c0, %c0_0, %c0_1] : memref<1x8x32xi8, #tpu.memory_space<vmem>>, vector<1x8x32xi8>
    %1 = vector.shape_cast %0 : vector<1x8x32xi8> to vector<8x32xi8>
    %2 = arith.uitofp %1 : vector<8x32xi8> to vector<8x32xf32>
    %c0_2 = arith.constant 0 : index
    %c0_3 = arith.constant 0 : index
    %c0_4 = arith.constant 0 : index
    %3 = vector.load %arg3[%c0_2, %c0_3, %c0_4] : memref<1x4x8xi8, #tpu.memory_space<vmem>>, vector<1x4x8xi8>
    %4 = vector.shape_cast %3 : vector<1x4x8xi8> to vector<4x8xi8>
    %5 = arith.uitofp %4 : vector<4x8xi8> to vector<4x8xf32>
    %cst = arith.constant dense<0.000000e+00> : vector<4x32xf32>
    %6 = tpu.matmul %5, %2, %cst {dimension_numbers = #tpu.dot_dimension_numbers<[1], [0], [0], [1], [0, 0, 1, 1], [], []>} : vector<4x8xf32>, vector<8x32xf32>, vector<4x32xf32> -> vector<4x32xf32>
    %7 = vector.extract_strided_slice %6 {offsets = [0, 0], sizes = [4, 8], strides = [1, 1]} : vector<4x32xf32> to vector<4x8xf32>
    %cst_5 = arith.constant dense<0.000000e+00> : vector<4x4xf32>
    %8 = tpu.matmul %7, %5, %cst_5 {dimension_numbers = #tpu.dot_dimension_numbers<[1], [1], [0], [0], [0, 0, 1, 0], [], []>} : vector<4x8xf32>, vector<4x8xf32>, vector<4x4xf32> -> vector<4x4xf32>
    %cst_6 = arith.constant 0.000000e+00 : f32
    %9 = vector.broadcast %cst_6 : f32 to vector<4x4xf32>
    %10 = arith.cmpf ogt, %8, %9 : vector<4x4xf32>
    %11 = arith.extui %10 : vector<4x4xi1> to vector<4x4xi32>
    %12 = arith.sitofp %11 : vector<4x4xi32> to vector<4x4xf32>
    %c0_7 = arith.constant 0 : index
    %c0_8 = arith.constant 0 : index
    %c0_9 = arith.constant 0 : index
    %13 = vector.load %arg4[%c0_7, %c0_8, %c0_9] : memref<1x4x16xf32, #tpu.memory_space<vmem>>, vector<1x4x4xf32>
    %14 = vector.shape_cast %13 : vector<1x4x4xf32> to vector<4x4xf32>
    %15 = vector.shape_cast %12 : vector<4x4xf32> to vector<1x4x4xf32>
    tpu.vector_store %arg4[%c0_7, %c0_8, %c0_9], %15 {strides = array<i32>} : memref<1x4x16xf32, #tpu.memory_space<vmem>>, vector<1x4x4xf32>,
    %16 = vector.extract_strided_slice %6 {offsets = [0, 8], sizes = [4, 8], strides = [1, 1]} : vector<4x32xf32> to vector<4x8xf32>
    %cst_10 = arith.constant dense<0.000000e+00> : vector<4x4xf32>
    %17 = tpu.matmul %16, %5, %cst_10 {dimension_numbers = #tpu.dot_dimension_numbers<[1], [1], [0], [0], [0, 0, 1, 0], [], []>} : vector<4x8xf32>, vector<4x8xf32>, vector<4x4xf32> -> vector<4x4xf32>
    %cst_11 = arith.constant 0.000000e+00 : f32
    %18 = vector.broadcast %cst_11 : f32 to vector<4x4xf32>
    %19 = arith.cmpf ogt, %17, %18 : vector<4x4xf32>
    %20 = arith.extui %19 : vector<4x4xi1> to vector<4x4xi32>
    %21 = arith.sitofp %20 : vector<4x4xi32> to vector<4x4xf32>
    %c0_12 = arith.constant 0 : index
    %c0_13 = arith.constant 0 : index
    %c4 = arith.constant 4 : index
    %22 = vector.load %arg4[%c0_12, %c0_13, %c4] : memref<1x4x16xf32, #tpu.memory_space<vmem>>, vector<1x4x4xf32>
    %23 = vector.shape_cast %22 : vector<1x4x4xf32> to vector<4x4xf32>
    %24 = vector.shape_cast %21 : vector<4x4xf32> to vector<1x4x4xf32>
    tpu.vector_store %arg4[%c0_12, %c0_13, %c4], %24 {strides = array<i32>} : memref<1x4x16xf32, #tpu.memory_space<vmem>>, vector<1x4x4xf32>,
    %25 = vector.extract_strided_slice %6 {offsets = [0, 16], sizes = [4, 8], strides = [1, 1]} : vector<4x32xf32> to vector<4x8xf32>
    %cst_14 = arith.constant dense<0.000000e+00> : vector<4x4xf32>
    %26 = tpu.matmul %25, %5, %cst_14 {dimension_numbers = #tpu.dot_dimension_numbers<[1], [1], [0], [0], [0, 0, 1, 0], [], []>} : vector<4x8xf32>, vector<4x8xf32>, vector<4x4xf32> -> vector<4x4xf32>
    %cst_15 = arith.constant 0.000000e+00 : f32
    %27 = vector.broadcast %cst_15 : f32 to vector<4x4xf32>
    %28 = arith.cmpf ogt, %26, %27 : vector<4x4xf32>
    %29 = arith.extui %28 : vector<4x4xi1> to vector<4x4xi32>
    %30 = arith.sitofp %29 : vector<4x4xi32> to vector<4x4xf32>
    %c0_16 = arith.constant 0 : index
    %c0_17 = arith.constant 0 : index
    %c8 = arith.constant 8 : index
    %31 = vector.load %arg4[%c0_16, %c0_17, %c8] : memref<1x4x16xf32, #tpu.memory_space<vmem>>, vector<1x4x4xf32>
    %32 = vector.shape_cast %31 : vector<1x4x4xf32> to vector<4x4xf32>
    %33 = vector.shape_cast %30 : vector<4x4xf32> to vector<1x4x4xf32>
    tpu.vector_store %arg4[%c0_16, %c0_17, %c8], %33 {strides = array<i32>} : memref<1x4x16xf32, #tpu.memory_space<vmem>>, vector<1x4x4xf32>,
    %34 = vector.extract_strided_slice %6 {offsets = [0, 24], sizes = [4, 8], strides = [1, 1]} : vector<4x32xf32> to vector<4x8xf32>
    %cst_18 = arith.constant dense<0.000000e+00> : vector<4x4xf32>
    %35 = tpu.matmul %34, %5, %cst_18 {dimension_numbers = #tpu.dot_dimension_numbers<[1], [1], [0], [0], [0, 0, 1, 0], [], []>} : vector<4x8xf32>, vector<4x8xf32>, vector<4x4xf32> -> vector<4x4xf32>
    %cst_19 = arith.constant 0.000000e+00 : f32
    %36 = vector.broadcast %cst_19 : f32 to vector<4x4xf32>
    %37 = arith.cmpf ogt, %35, %36 : vector<4x4xf32>
    %38 = arith.extui %37 : vector<4x4xi1> to vector<4x4xi32>
    %39 = arith.sitofp %38 : vector<4x4xi32> to vector<4x4xf32>
    %c0_20 = arith.constant 0 : index
    %c0_21 = arith.constant 0 : index
    %c12 = arith.constant 12 : index
    %40 = vector.load %arg4[%c0_20, %c0_21, %c12] : memref<1x4x16xf32, #tpu.memory_space<vmem>>, vector<1x4x4xf32>
    %41 = vector.shape_cast %40 : vector<1x4x4xf32> to vector<4x4xf32>
    %42 = vector.shape_cast %39 : vector<4x4xf32> to vector<1x4x4xf32>
    tpu.vector_store %arg4[%c0_20, %c0_21, %c12], %42 {strides = array<i32>} : memref<1x4x16xf32, #tpu.memory_space<vmem>>, vector<1x4x4xf32>,
    return
  }
  func.func @transform_0(%arg0: i32, %arg1: i32) -> (i32, i32, i32) {
    %c0_i32 = arith.constant 0 : i32
    %c0_i32_0 = arith.constant 0 : i32
    return %arg0, %c0_i32, %arg1 : i32, i32, i32
  }
  func.func @transform_1(%arg0: i32, %arg1: i32) -> (i32, i32, i32) {
    %c0_i32 = arith.constant 0 : i32
    %c0_i32_0 = arith.constant 0 : i32
    %c0_i32_1 = arith.constant 0 : i32
    return %arg0, %c0_i32, %c0_i32_0 : i32, i32, i32
  }
  func.func @transform_2(%arg0: i32, %arg1: i32) -> (i32, i32, i32) {
    %c0_i32 = arith.constant 0 : i32
    %c0_i32_0 = arith.constant 0 : i32
    return %arg0, %c0_i32, %arg1 : i32, i32, i32
  }
}

</mosaic_0001>

<bundles_post_ra>
// kernel: _device_forward.5
= control target key start
LH: loop header
LB: loop body
LE: loop exit
PB: predicated region body
PF: predicated region fallthrough
CT: control target
= control target key end

     0   :  { %7 = vsyncpa [#allocation3], 0  ;;  %s740_s0 = inlined_call_operand.vmem [shape: bf16[2,8,32], index: 0, kind: input, shape index: {}]   ;;  %s741_s1 = inlined_call_operand.vmem [shape: u8[2,4,8], index: 1, kind: input, shape index: {}]   ;;  %s742_s2 = inlined_call_operand.hbm [shape: f32[2,4,16], index: 2, kind: output, shape index: {}]  }
   0x1   :  { %9 = vsyncpa [#allocation3 + $0x1], 0  ;;  %s620_s9 = smov 0   ;;  %s622_s10 = smov 0  }
   0x2   :  { %s624_s11 = smov 0   ;;  %s626_s12 = smov 0  }
   0x3   :  { %s628_s13 = smov 0   ;;  %s630_s14 = smov 0  }
   0x4 LB: > { %s432_s15 = sadd.s32 4294967295, %s596_s14   ;;  %s433_s16 = sadd.s32 4294967294, %s596_s14   ;;  %s596_s14 = sphi %s630_s14, %s15_s14   ;;  %s592_s13 = sphi %s628_s13, %s749_s13   ;;  %s588_s12 = sphi %s626_s12, %s748_s12   ;;  %s584_s11 = sphi %s624_s11, %s747_s11   ;;  %s580_s10 = sphi %s622_s10, %s746_s10   ;;  %s576_s9 = sphi %s620_s9, %s745_s9  }
   0x5   : > { %s27_s17 = sadd.s32 1, %s592_s13  ;;  %s90_s18 = sadd.s32 1, %s584_s11 }
   0x6   : > { %p29_p0 = scmp.ge.s32.totalorder %s27_s17, 2  ;;  %p100_p1 = scmp.ne.s32.totalorder %s584_s11, %s580_s10 }
   0x7   : > { %p101_p2 = scmp.eq.s32.totalorder %s432_s15, 1  ;;  %p106_p3 = scmp.ne.s32.totalorder %s580_s10, %s576_s9 }
   0x8   : > { %s751_s17 = smov (%p29_p0, %s27_s17), 0  ;;  %p107_p5 = scmp.eq.s32.totalorder %s433_s16, 1 }
   0x9   : > { %p660_p4 = por %p101_p2, %p100_p1  ;;  %s85_s20 = ssub.s32 %s592_s13, %s751_s17 }
   0xa   : > { %p436_p6 = scmp.ge.s32.totalorder %s596_s14, 1  ;;  %p88_p7 = scmp.eq.s32.totalorder %s85_s20, 0 }
   0xb   : > { %p667_p8 = por %p107_p5, %p106_p3  ;;  %p141_p9 = scmp.lt.s32.totalorder %s596_s14, 3 }
   0xc   : > { %s673_s22 = scalar_select %p88_p7, %s584_s11, %s90_s18  }
   0xd   : > { %p142_p10 = pnand %p436_p6, %p141_p9 }
   0xe   : > { %p168_p11 = scmp.lt.s32.totalorder (!%p142_p10), %s588_s12, 1  ;;  %s598_s3 = smov (!%p142_p10), 104  }
   0xf   : > { %145 = sbr.rel (%p142_p10) target bundleno = 525 (0x20d), region = 28  ;;  %s599_s4 = smov (!%p142_p10), 120  }
  0x10   : > { %s600_s5 = smov (!%p142_p10), 112   ;;  %s165_s6 = sand.u32 (!%p142_p10), 1, %s580_s10  }
  0x11   : > { %s437_s7 = sshll.u32 (!%p142_p10), %s165_s6, 2  ;;  %s602_s15 = smov (!%p142_p10), 4  }
  0x12   : > { %s695_s8 = scalar_lea.vmem (!%p142_p10), [#allocation2], %s437_s7  ;;  %s603_s16 = smov (!%p142_p10), 8  }
  0x13   : > { %s604_s18 = smov (!%p142_p10), 12   ;;  %s453_s20 = sshll.u32 (!%p142_p10), %s588_s12, 2 }
  0x14   : > { %s169_s23 = scalar_select %p168_p11, %s588_s12, 1  ;;  %vm184_vm0 = vcmask 64512   ;;  %vm234_vm1 = vcmask 27648   ;;  %v601_v11 = vmov 0.0   ;;  %vm267_vm6 = vcmask 60448  }
  0x15   : > { %s347_s25 = scalar_lea.hbm %s742_s2, %s453_s20  ;;  %s349_s26 = sshll.u32 %s695_s8, 4  ;;  %vm300_vm7 = vcmask 93248   ;;  %vm333_vm8 = vcmask 126048   ;;  %s350_s26 = int_to_ptr.vmem [resolvable:$true] %s349_s26 }
  0x16   : > { %s438_s24 = sshll.u32 %s169_s23, 2  ;;  %s177_s27 = scalar_lea.vmem %s741_s1, %s169_s23 }
  0x17   : > { %s174_s30 = scalar_lea.vmem %s740_s0, %s438_s24  ;;  %v180_v0 = vld [vmem:[%s177_s27] sm:$0x1]  ;;  %s351_s27 = sshll.u32 %s347_s25, 4  ;;  %s352_s27 = int_to_ptr.hbm [resolvable:$true] %s351_s27 }
  0x18   : > { %v178_v1 = vld [vmem:[%s174_s30] sm:$0xf]  ;;  %v181_v2 = vunpack.c.0.s8 %v180_v0  ;;  %s336_s28 = scalar_lea.sflag [#allocation3], %s165_s6  ;;  %s532_s12 = sshra.s32 %s352_s27, 4  ;;  %s533_s12 = int_to_ptr.hbm [resolvable:$true] %s532_s12 }
  0x19   : > { %v179_v3 = vunpack.c.l.bf16 %v178_v1  ;;  %s534_s29 = scalar_lea.hbm %s533_s12, 4  ;;  %p539_p1 = scmp.lt.s32.totalorder %s533_s12, %s742_s2 }
  0x1a   : > { %v182_v4 = vand.u32 255, %v181_v2  ;;  %p535_p12 = scmp.ne.s32.totalorder %s533_s12, %s534_s29 }
  0x1b   : > { %203 = vmatpush.msra.mxu0 %v179_v3 }
  0x1c   : > { %v183_v5 = vcvt.s32.f32 %v182_v4  ;;  %p536_p13 = pnand %p535_p12, %p660_p4 }
  0x1e   : > { %439 = vmatmul.msk.f32.vlgmr.msra.gmra.mxu0 %vm184_vm0, %v183_v5  ;;  %440 = vmatpush.xpose.msk.msra.mxu1 %vm184_vm0, %v183_v5  ;;  %p537_p0 = pneg %p536_p13 }
  0x1f   : > { %443 = vmatpush.xpose.msk.msra.mxu2 %vm184_vm0, %v183_v5  ;;  %449 = vmatpush.xpose.msk.msrb.mxu0 %vm184_vm0, %v183_v5 }
  0x20   : > { %446 = vmatpush.xpose.msk.msra.mxu3 %vm184_vm0, %v183_v5 }
  0x9b   : > { %v205_v6 = vpop.f32.mrf.mxu0 }
  0x9c   : > { %302 = vrot.lane.b32.xlu1 %v205_v6, %s598_s3  ;;  %236 = vrot.lane.b32.xlu0 %v205_v6, %s599_s4  ;;  %s538_s4 = scalar_lea.hbm %s742_s2, 8 }
  0x9d   : > { %441 = vmatmul.msk.f32.vlgmr.msra.gmra.mxu1 %vm184_vm0, %v205_v6  ;;  %p540_p2 = scmp.lt.s32.totalorder %s538_s4, %s534_s29 }
  0x9f   : > { %p541_p3 = por %p540_p2, %p539_p1 }
  0xa1   : > { %p542_p5 = pnand %p541_p3, %p537_p0 }
  0xa4   : > { %269 = vrot.lane.b32.xlu0 %v205_v6, %s600_s5 }
 0x10e   : > { %v303_v7 = vpop.permute.xlu1 %302  ;;  %v237_v8 = vpop.permute.xlu0 %236 }
 0x10f   : > { %444 = vmatmul.msk.f32.vlgmr.msra.gmra.mxu2 %vm184_vm0, %v237_v8  ;;  %450 = vmatmul.msk.f32.vlgmr.msrb.gmra.mxu0 %vm184_vm0, %v303_v7 }
 0x116   : > { %v270_v9 = vpop.permute.xlu0 %269 }
 0x117   : > { %447 = vmatmul.msk.f32.vlgmr.msra.gmra.mxu3 %vm184_vm0, %v270_v9 }
 0x11a   : > { %v228_v10 = vpop.f32.mrf.mxu1 }
 0x11b   : > { %vm231_vm2 = vcmp.gt.f32.partialorder %v228_v10, 0.0 }
 0x11c   : > { %v442_v12 = vsel %vm231_vm2, 1.0, %v601_v11 }
 0x11d   : > { %235 = vst.msk [vmem:[%s695_s8] sm:$0xf] %vm234_vm1, %v442_v12 }
 0x18c   : > { %v323_v17 = vpop.f32.mrf.mxu0 }
 0x18d   : > { %vm326_vm5 = vcmp.gt.f32.partialorder %v323_v17, 0.0 }
 0x18e   : > { %v451_v18 = vsel %vm326_vm5, 1.0, %v601_v11 }
 0x192   : > { %v257_v13 = vpop.f32.mrf.mxu2 }
 0x193   : > { %vm260_vm3 = vcmp.gt.f32.partialorder %v257_v13, 0.0 }
 0x194   : > { %v445_v14 = vsel %vm260_vm3, 1.0, %v601_v11 }
 0x195   : > { %264 = vrot.lane.b32.xlu1 %v445_v14, %s602_s15 }
 0x19a   : > { %v290_v15 = vpop.f32.mrf.mxu3 }
 0x19b   : > { %vm293_vm4 = vcmp.gt.f32.partialorder %v290_v15, 0.0 }
 0x19c   : > { %v448_v16 = vsel %vm293_vm4, 1.0, %v601_v11 }
 0x19d   : > { %297 = vrot.lane.b32.xlu2 %v448_v16, %s603_s16 }
 0x1a5   : > { %330 = vrot.lane.b32.xlu2 %v451_v18, %s604_s18 }
 0x1f7   : > { %v298_v19 = vpop.permute.xlu2 %297 }
 0x1ff   : > { %v331_v21 = vpop.permute.xlu2 %330 }
 0x207   : > { %v265_v20 = vpop.permute.xlu1 %264 }
 0x208   : > { %268 = vst.msk [vmem:[%s695_s8] sm:$0xf] %vm267_vm6, %v265_v20 }
 0x209   : > { %301 = vst.msk [vmem:[%s695_s8] sm:$0xf] %vm300_vm7, %v298_v19 }
 0x20a   : > { %334 = vst.msk [vmem:[%s695_s8] sm:$0xf] %vm333_vm8, %v331_v21 }
 0x20b   : > { %545 = shalt.err (!%p542_p5)
}
 0x20c   : > { %456 = dma.vmem_to_hbm [thread:$0]  (%p660_p4), %s350_s26, 64, %s352_s27, %s336_s28  }
 0x20d PF: > { %p462_p6 = scmp.ge.s32.totalorder %s596_s14, 2  ;;  %s363_s6 = sand.u32 1, %s576_s9  }
 0x20e   : > { %s364_s8 = scalar_lea.sflag [#allocation3], %s363_s6 }
 0x20f   : > { %p459_p7 = pnand %p462_p6, %p667_p8 }
 0x211   : > { %p460_p9 = pneg %p459_p7 }
 0x213   : > { %571 = dma.done.wait (%p460_p9), %s364_s8, 64  }
 0x214   : > { %573 = vsyncadd (%p460_p9), %s364_s8, 4294967232  ;;  %s15_s14 = sadd.s32 1, %s596_s14   ;;  %s745_s9 = smov %s580_s10 }
 0x215   : > { %p12_p10 = scmp.ge.s32.totalorder %s15_s14, 4   ;;  %s746_s10 = smov %s584_s11 }
 0x216   : > { %s747_s11 = smov %s673_s22  ;;  %s748_s12 = smov %s592_s13 }
 0x217   : > { %s749_s13 = smov %s751_s17  ;;  %14 = sbr.rel (!%p12_p10) target bundleno = 4 (0x4), region = 66 }
 0x21c   :  { %370 = vsyncpa [#allocation3], 1 }
 0x21d   :  { %372 = vsyncpa [#allocation3 + $0x1], 1 }

// kernel: _device_forward.3
= control target key start
LH: loop header
LB: loop body
LE: loop exit
PB: predicated region body
PF: predicated region fallthrough
CT: control target
= control target key end

     0   :  { %s571_s15 = smov 0   ;;  %s573_s16 = smov 0   ;;  %s619_s0 = inlined_call_operand.vmem [shape: f32[2,8,32], index: 0, kind: input, shape index: {}]   ;;  %s620_s1 = inlined_call_operand.vmem [shape: u8[2,8,32], index: 1, kind: input, shape index: {}]   ;;  %s621_s2 = inlined_call_operand.vmem [shape: u8[2,8,32], index: 2, kind: input, shape index: {}]   ;;  %s622_s3 = inlined_call_operand.vmem [shape: f32[2,1,1,1], index: 3, kind: output, shape index: {0}]   ;;  %s623_s4 = inlined_call_operand.vmem [shape: bf16[2,8,32], index: 4, kind: output, shape index: {1}]  }
   0x1   :  { %s575_s17 = smov 0  }
   0x2 LB: > { %s27_s18 = sadd.s32 1, %s539_s16  ;;  %p482_p0 = scmp.ge.s32.totalorder %s543_s17, 1  ;;  %s543_s17 = sphi %s575_s17, %s15_s17   ;;  %s539_s16 = sphi %s573_s16, %s625_s16   ;;  %s535_s15 = sphi %s571_s15, %s624_s15  }
   0x3   : > { %p29_p1 = scmp.ge.s32.totalorder %s27_s18, 2  ;;  %p213_p2 = scmp.lt.s32.totalorder %s543_s17, 3 }
   0x5   : > { %s627_s18 = smov (%p29_p1, %s27_s18), 0  ;;  %p214_p3 = pnand %p482_p0, %p213_p2 }
   0x6   : > { %p263_p4 = scmp.lt.s32.totalorder (!%p214_p3), %s535_s15, 1 }
   0x7   : > { %217 = sbr.rel (%p214_p3) target bundleno = 225 (0xe1), region = 32 }
   0xc   : > { %s629_s15 = smov (!%p263_p4, %s535_s15), 1  ;;  %v545_v3 = vmov 0.0   ;;  %vm337_vm1 = vcmask 257024   ;;  %vm318_vm2 = vcmask 261120   ;;  %vm331_vm3 = vcmask 0  }
   0xd   : > { %s483_s19 = sshll.u32 %s629_s15, 3  ;;  %s484_s20 = sshll.u32 %s629_s15, 1 }
   0xe   : > { %s269_s23 = scalar_lea.vmem %s619_s0, %s483_s19  ;;  %s276_s26 = scalar_lea.vmem %s620_s1, %s484_s20 }
   0xf   : > { %s486_s27 = sshll.u32 %s629_s15, 2  ;;  %v297_v0 = vld [vmem:[%s269_s23] sm:$0xff]  ;;  %s283_s7 = scalar_lea.vmem %s621_s2, %s484_s20 }
  0x10   : > { %v306_v1 = vand.u32 2147483647, %v297_v0  ;;  %vm333_vm0 = vcmp.gt.f32.partialorder %v297_v0, 0.0  ;;  %s296_s30 = scalar_lea.vmem %s623_s4, %s486_s27  ;;  %v298_v2 = vld [vmem:[%s276_s26] sm:$0x3]  ;;  %v310_v15 = vmax.f32 %v297_v0, 0.0  ;;  %s289_s10 = scalar_lea.vmem %s622_s3, %s629_s15 }
  0x11   : > { %v487_v4 = vsel %vm333_vm0, 1.0, %v545_v3  ;;  %v299_v7 = vunpack.c.0.s8 %v298_v2  ;;  %v302_v10 = vld [vmem:[%s283_s7] sm:$0x3] }
  0x12   : > { %v307_v5 = vsub.f32 0.0, %v306_v1  ;;  %v336_v6 = vpack.c.bf16 %v487_v4, %v487_v4  ;;  %v303_v14 = vunpack.c.0.s8 %v302_v10 }
  0x13   : > { %v300_v9 = vand.u32 255, %v299_v7 }
  0x14   : > { %v308_v8 = vmul.f32 1.442695, %v307_v5  ;;  %338 = vst.msk [vmem:[%s296_s30] sm:$0xf] %vm337_vm1, %v336_v6  ;;  %v304_v17 = vand.u32 255, %v303_v14 }
  0x15   : > { %v301_v12 = vcvt.s32.f32 %v300_v9 }
  0x16   : > { %517 = vpow2.f32 %v308_v8  ;;  %v305_v20 = vcvt.s32.f32 %v304_v17 }
  0x17   : > { %v311_v16 = vmul.f32 %v301_v12, %v297_v0 }
  0x19   : > { %v312_v18 = vsub.f32 %v310_v15, %v311_v16 }
  0x1c   : > { %v518_v11 = vpop.eup %517 }
  0x1d   : > { %v313_v13 = vadd.f32 1.0, %v518_v11 }
  0x1f   : > { %519 = vlog2.f32 %v313_v13 }
  0x25   : > { %v520_v19 = vpop.eup %519 }
  0x26   : > { %v315_v21 = vmul.f32 0.6931472, %v520_v19 }
  0x28   : > { %v316_v22 = vadd.f32 %v315_v21, %v312_v18 }
  0x2a   : > { %v317_v23 = vmul.f32 %v316_v22, %v305_v20 }
  0x2c   : > { %v319_v24 = vsel %vm318_vm2, %v317_v23, 0.0 }
  0x2d   : > { %320 = vadd.xlane.f32.xlu0 %v319_v24 }
  0xa0   : > { %v321_v25 = vpop.xlane.xlu0 %320 }
  0xa1   : > { %v322_v26 = vrot.slane %v321_v25, 4 }
  0xa3   : > { %v323_v27 = vadd.f32 %v322_v26, %v321_v25 }
  0xa5   : > { %v324_v28 = vrot.slane %v323_v27, 2 }
  0xa7   : > { %v325_v29 = vadd.f32 %v324_v28, %v323_v27 }
  0xa9   : > { %v326_v30 = vrot.slane %v325_v29, 1 }
  0xab   : > { %v327_v31 = vadd.f32 %v326_v30, %v325_v29 }
  0xad   : > { %490 = vpush %v327_v31 }
  0xde   : > { %s491_s11 = spop %490 }
  0xdf   : > { %v329_v32 = vstv %s491_s11 }
  0xe0   : > { %332 = vst.msk [vmem:[%s289_s10] sm:$0x1] %vm331_vm3, %v329_v32 }
  0xe1 PF: > { %s15_s17 = sadd.s32 1, %s543_s17   ;;  %s624_s15 = smov %s539_s16 }
  0xe2   : > { %p12_p5 = scmp.ge.s32.totalorder %s15_s17, 4   ;;  %s625_s16 = smov %s627_s18 }
  0xe4   :  { %14 = sbr.rel (!%p12_p5) target bundleno = 2 (0x2), region = 80 }

// kernel: _device_forward.4
= control target key start
LH: loop header
LB: loop body
LE: loop exit
PB: predicated region body
PF: predicated region fallthrough
CT: control target
= control target key end

     0   :  { %7 = vsyncpa [#allocation3], 0  ;;  %s742_s0 = inlined_call_operand.vmem [shape: u8[2,8,32], index: 0, kind: input, shape index: {}]   ;;  %s743_s1 = inlined_call_operand.vmem [shape: u8[2,4,8], index: 1, kind: input, shape index: {}]   ;;  %s744_s2 = inlined_call_operand.hbm [shape: f32[2,4,16], index: 2, kind: output, shape index: {}]  }
   0x1   :  { %9 = vsyncpa [#allocation3 + $0x1], 0  ;;  %s622_s9 = smov 0   ;;  %s624_s10 = smov 0  }
   0x2   :  { %s626_s11 = smov 0   ;;  %s628_s12 = smov 0  }
   0x3   :  { %s630_s13 = smov 0   ;;  %s632_s14 = smov 0  }
   0x4 LB: > { %s434_s15 = sadd.s32 4294967295, %s598_s14   ;;  %s435_s16 = sadd.s32 4294967294, %s598_s14   ;;  %s598_s14 = sphi %s632_s14, %s15_s14   ;;  %s594_s13 = sphi %s630_s13, %s751_s13   ;;  %s590_s12 = sphi %s628_s12, %s750_s12   ;;  %s586_s11 = sphi %s626_s11, %s749_s11   ;;  %s582_s10 = sphi %s624_s10, %s748_s10   ;;  %s578_s9 = sphi %s622_s9, %s747_s9  }
   0x5   : > { %s27_s17 = sadd.s32 1, %s594_s13  ;;  %s90_s18 = sadd.s32 1, %s586_s11 }
   0x6   : > { %p29_p0 = scmp.ge.s32.totalorder %s27_s17, 2  ;;  %p100_p1 = scmp.ne.s32.totalorder %s586_s11, %s582_s10 }
   0x7   : > { %p101_p2 = scmp.eq.s32.totalorder %s434_s15, 1  ;;  %p106_p3 = scmp.ne.s32.totalorder %s582_s10, %s578_s9 }
   0x8   : > { %s753_s17 = smov (%p29_p0, %s27_s17), 0  ;;  %p107_p5 = scmp.eq.s32.totalorder %s435_s16, 1 }
   0x9   : > { %p662_p4 = por %p101_p2, %p100_p1  ;;  %s85_s20 = ssub.s32 %s594_s13, %s753_s17 }
   0xa   : > { %p438_p6 = scmp.ge.s32.totalorder %s598_s14, 1  ;;  %p88_p7 = scmp.eq.s32.totalorder %s85_s20, 0 }
   0xb   : > { %p669_p8 = por %p107_p5, %p106_p3  ;;  %p141_p9 = scmp.lt.s32.totalorder %s598_s14, 3 }
   0xc   : > { %s675_s22 = scalar_select %p88_p7, %s586_s11, %s90_s18  }
   0xd   : > { %p142_p10 = pnand %p438_p6, %p141_p9 }
   0xe   : > { %p168_p11 = scmp.lt.s32.totalorder (!%p142_p10), %s590_s12, 1  ;;  %s600_s3 = smov (!%p142_p10), 104  }
   0xf   : > { %145 = sbr.rel (%p142_p10) target bundleno = 527 (0x20f), region = 28  ;;  %s601_s4 = smov (!%p142_p10), 120  }
  0x10   : > { %s602_s5 = smov (!%p142_p10), 112   ;;  %s165_s6 = sand.u32 (!%p142_p10), 1, %s582_s10  }
  0x11   : > { %s439_s7 = sshll.u32 (!%p142_p10), %s165_s6, 2  ;;  %s604_s15 = smov (!%p142_p10), 4  }
  0x12   : > { %s697_s8 = scalar_lea.vmem (!%p142_p10), [#allocation2], %s439_s7  ;;  %s605_s16 = smov (!%p142_p10), 8  }
  0x13   : > { %s606_s18 = smov (!%p142_p10), 12   ;;  %s455_s20 = sshll.u32 (!%p142_p10), %s590_s12, 2 }
  0x14   : > { %s169_s23 = scalar_select %p168_p11, %s590_s12, 1  ;;  %vm186_vm0 = vcmask 64512   ;;  %vm236_vm1 = vcmask 27648   ;;  %v603_v13 = vmov 0.0   ;;  %vm269_vm6 = vcmask 60448  }
  0x15   : > { %s349_s25 = scalar_lea.hbm %s744_s2, %s455_s20  ;;  %s351_s26 = sshll.u32 %s697_s8, 4  ;;  %vm302_vm7 = vcmask 93248   ;;  %vm335_vm8 = vcmask 126048   ;;  %s352_s26 = int_to_ptr.vmem [resolvable:$true] %s351_s26 }
  0x16   : > { %s440_s24 = sshll.u32 %s169_s23, 1  ;;  %s177_s27 = scalar_lea.vmem %s743_s1, %s169_s23 }
  0x17   : > { %s174_s30 = scalar_lea.vmem %s742_s0, %s440_s24  ;;  %v182_v0 = vld [vmem:[%s177_s27] sm:$0x1]  ;;  %s353_s27 = sshll.u32 %s349_s25, 4  ;;  %s354_s27 = int_to_ptr.hbm [resolvable:$true] %s353_s27 }
  0x18   : > { %v178_v1 = vld [vmem:[%s174_s30] sm:$0x3]  ;;  %v183_v2 = vunpack.c.0.s8 %v182_v0  ;;  %s338_s28 = scalar_lea.sflag [#allocation3], %s165_s6  ;;  %s534_s12 = sshra.s32 %s354_s27, 4  ;;  %s535_s12 = int_to_ptr.hbm [resolvable:$true] %s534_s12 }
  0x19   : > { %v179_v3 = vunpack.c.0.s8 %v178_v1  ;;  %s536_s29 = scalar_lea.hbm %s535_s12, 4  ;;  %p541_p1 = scmp.lt.s32.totalorder %s535_s12, %s744_s2 }
  0x1a   : > { %v184_v4 = vand.u32 255, %v183_v2  ;;  %p537_p12 = scmp.ne.s32.totalorder %s535_s12, %s536_s29 }
  0x1b   : > { %v180_v5 = vand.u32 255, %v179_v3 }
  0x1c   : > { %v185_v6 = vcvt.s32.f32 %v184_v4  ;;  %p538_p13 = pnand %p537_p12, %p662_p4 }
  0x1d   : > { %v181_v7 = vcvt.s32.f32 %v180_v5 }
  0x1e   : > { %442 = vmatpush.xpose.msk.msra.mxu1 %vm186_vm0, %v185_v6  ;;  %445 = vmatpush.xpose.msk.msra.mxu2 %vm186_vm0, %v185_v6  ;;  %p539_p0 = pneg %p538_p13 }
  0x1f   : > { %205 = vmatpush.msra.mxu0 %v181_v7  ;;  %448 = vmatpush.xpose.msk.msra.mxu3 %vm186_vm0, %v185_v6 }
  0x20   : > { %441 = vmatmul.msk.f32.vlgmr.msra.gmra.mxu0 %vm186_vm0, %v185_v6 }
  0x21   : > { %451 = vmatpush.xpose.msk.msrb.mxu0 %vm186_vm0, %v185_v6 }
  0x9d   : > { %v207_v8 = vpop.f32.mrf.mxu0 }
  0x9e   : > { %304 = vrot.lane.b32.xlu1 %v207_v8, %s600_s3  ;;  %238 = vrot.lane.b32.xlu0 %v207_v8, %s601_s4  ;;  %s540_s4 = scalar_lea.hbm %s744_s2, 8 }
  0x9f   : > { %443 = vmatmul.msk.f32.vlgmr.msra.gmra.mxu1 %vm186_vm0, %v207_v8  ;;  %p542_p2 = scmp.lt.s32.totalorder %s540_s4, %s536_s29 }
  0xa1   : > { %p543_p3 = por %p542_p2, %p541_p1 }
  0xa3   : > { %p544_p5 = pnand %p543_p3, %p539_p0 }
  0xa6   : > { %271 = vrot.lane.b32.xlu0 %v207_v8, %s602_s5 }
 0x110   : > { %v305_v9 = vpop.permute.xlu1 %304  ;;  %v239_v10 = vpop.permute.xlu0 %238 }
 0x111   : > { %446 = vmatmul.msk.f32.vlgmr.msra.gmra.mxu2 %vm186_vm0, %v239_v10  ;;  %452 = vmatmul.msk.f32.vlgmr.msrb.gmra.mxu0 %vm186_vm0, %v305_v9 }
 0x118   : > { %v272_v11 = vpop.permute.xlu0 %271 }
 0x119   : > { %449 = vmatmul.msk.f32.vlgmr.msra.gmra.mxu3 %vm186_vm0, %v272_v11 }
 0x11c   : > { %v230_v12 = vpop.f32.mrf.mxu1 }
 0x11d   : > { %vm233_vm2 = vcmp.gt.f32.partialorder %v230_v12, 0.0 }
 0x11e   : > { %v444_v14 = vsel %vm233_vm2, 1.0, %v603_v13 }
 0x11f   : > { %237 = vst.msk [vmem:[%s697_s8] sm:$0xf] %vm236_vm1, %v444_v14 }
 0x18e   : > { %v325_v19 = vpop.f32.mrf.mxu0 }
 0x18f   : > { %vm328_vm5 = vcmp.gt.f32.partialorder %v325_v19, 0.0 }
 0x190   : > { %v453_v20 = vsel %vm328_vm5, 1.0, %v603_v13 }
 0x194   : > { %v259_v15 = vpop.f32.mrf.mxu2 }
 0x195   : > { %vm262_vm3 = vcmp.gt.f32.partialorder %v259_v15, 0.0 }
 0x196   : > { %v447_v16 = vsel %vm262_vm3, 1.0, %v603_v13 }
 0x197   : > { %266 = vrot.lane.b32.xlu1 %v447_v16, %s604_s15 }
 0x19c   : > { %v292_v17 = vpop.f32.mrf.mxu3 }
 0x19d   : > { %vm295_vm4 = vcmp.gt.f32.partialorder %v292_v17, 0.0 }
 0x19e   : > { %v450_v18 = vsel %vm295_vm4, 1.0, %v603_v13 }
 0x19f   : > { %299 = vrot.lane.b32.xlu2 %v450_v18, %s605_s16 }
 0x1a7   : > { %332 = vrot.lane.b32.xlu2 %v453_v20, %s606_s18 }
 0x1f9   : > { %v300_v21 = vpop.permute.xlu2 %299 }
 0x201   : > { %v333_v23 = vpop.permute.xlu2 %332 }
 0x209   : > { %v267_v22 = vpop.permute.xlu1 %266 }
 0x20a   : > { %270 = vst.msk [vmem:[%s697_s8] sm:$0xf] %vm269_vm6, %v267_v22 }
 0x20b   : > { %303 = vst.msk [vmem:[%s697_s8] sm:$0xf] %vm302_vm7, %v300_v21 }
 0x20c   : > { %336 = vst.msk [vmem:[%s697_s8] sm:$0xf] %vm335_vm8, %v333_v23 }
 0x20d   : > { %547 = shalt.err (!%p544_p5)
}
 0x20e   : > { %458 = dma.vmem_to_hbm [thread:$0]  (%p662_p4), %s352_s26, 64, %s354_s27, %s338_s28  }
 0x20f PF: > { %p464_p6 = scmp.ge.s32.totalorder %s598_s14, 2  ;;  %s365_s6 = sand.u32 1, %s578_s9  }
 0x210   : > { %s366_s8 = scalar_lea.sflag [#allocation3], %s365_s6 }
 0x211   : > { %p461_p7 = pnand %p464_p6, %p669_p8 }
 0x213   : > { %p462_p9 = pneg %p461_p7 }
 0x215   : > { %573 = dma.done.wait (%p462_p9), %s366_s8, 64  }
 0x216   : > { %575 = vsyncadd (%p462_p9), %s366_s8, 4294967232  ;;  %s15_s14 = sadd.s32 1, %s598_s14   ;;  %s747_s9 = smov %s582_s10 }
 0x217   : > { %p12_p10 = scmp.ge.s32.totalorder %s15_s14, 4   ;;  %s748_s10 = smov %s586_s11 }
 0x218   : > { %s749_s11 = smov %s675_s22  ;;  %s750_s12 = smov %s594_s13 }
 0x219   : > { %s751_s13 = smov %s753_s17  ;;  %14 = sbr.rel (!%p12_p10) target bundleno = 4 (0x4), region = 66 }
 0x21e   :  { %372 = vsyncpa [#allocation3], 1 }
 0x21f   :  { %374 = vsyncpa [#allocation3 + $0x1], 1 }

</bundles_post_ra>
